<compile_context>
chip_gen: v5e
topology: v5e:2x2
jax: 0.10.0
libtpu: 0.0.40
codegen_flags: <defaults>
</compile_context>

<pallas_src>
import numpy as np
import jax
import jax.numpy as jnp
from jax.experimental import pallas as pl
from jax.experimental.pallas import tpu as pltpu

B, S, D = 2, 8, 64          # batch, seq, d_model
NUM_HEADS = 8
HEAD_DIM = D // NUM_HEADS
D_FF = 128
LN_EPS = 1e-5
ROWS = B * S

# The roll-based rotary relies on the wrap-around lanes being zeroed by the parity
# masks (sina is 0 on odd lanes, sinb is 0 on even lanes); this requires an even D.
assert D % 2 == 0, "rotary parity masking assumes an even feature dimension"


def encoder_layer_kernel(x_ref, cos_ref, sina_ref, sinb_ref,
                         wqk_ref, bqk_ref, wv_ref, bv_ref, wo_ref, bo_ref,
                         mask_ref,
                         g1_ref, be1_ref, w1_ref, b1_ref, w2_ref, b2_ref,
                         g2_ref, be2_ref,
                         o_ref):
    x = x_ref[...]                                            # (ROWS, D) f32

    # --- rotary embedding on the q/k input (f32 elementwise) ----------------
    # rotate_half: even lanes take -x[i+1], odd lanes take x[i-1]; the parity
    # sign/select is pre-folded into sina (even lanes) / sinb (odd lanes).
    # The circular-wrap lane of each roll is killed by the zero in sina (last,
    # odd lane) / sinb (first, even lane).
    cos = jnp.tile(cos_ref[...], (B, 1))                      # (ROWS, D)
    sina = jnp.tile(sina_ref[...], (B, 1))
    sinb = jnp.tile(sinb_ref[...], (B, 1))
    x_next = pltpu.roll(x, shift=D - 1, axis=1)               # x[..., i+1]
    x_prev = pltpu.roll(x, shift=1, axis=1)                   # x[..., i-1]
    qk = x * cos + x_next * sina + x_prev * sinb

    # --- projections: fused q/k (scale folded into Wq/bq); v from UN-rotated x
    qkp = jnp.dot(qk.astype(jnp.bfloat16), wqk_ref[...],
                  preferred_element_type=jnp.float32) + bqk_ref[...]      # (ROWS, 2D)
    v = jnp.dot(x.astype(jnp.bfloat16), wv_ref[...],
                preferred_element_type=jnp.float32) + bv_ref[...]         # (ROWS, D)
    q = qkp[:, :D]
    k = qkp[:, D:]

    # --- attention via block-diagonal K/V: no per-head slicing --------------
    # mask[h*S + t, d] = 1 iff d belongs to head h.
    mask = mask_ref[...]                                      # (H*S, D) f32
    outs = []
    for b in range(B):                                        # B = 2, static unroll
        lo, hi = b * S, (b + 1) * S
        qb = q[lo:hi, :].astype(jnp.bfloat16)                                  # (S, D)
        kbd = (jnp.tile(k[lo:hi, :], (NUM_HEADS, 1)) * mask).astype(jnp.bfloat16)  # (H*S, D)
        vbd = (jnp.tile(v[lo:hi, :], (NUM_HEADS, 1)) * mask).astype(jnp.bfloat16)  # (H*S, D)
        # scores[s, h*S + t] = <q_h[s], k_h[t]>   (heads laid out along lanes)
        scores = jnp.einsum('sd,ud->su', qb, kbd,
                            preferred_element_type=jnp.float32)            # (S, H*S)
        # Row-wide max is a valid softmax shift (cheaper than per-head maxes).
        scores = scores - jnp.max(scores, axis=-1, keepdims=True)
        p = jnp.exp(scores)                                                  # f32
        # Unnormalized PV: already back in the (s, h*HD + d) output layout.
        o_un = jnp.dot(p.astype(jnp.bfloat16), vbd,
                       preferred_element_type=jnp.float32)                  # (S, D)
        # Per-head softmax denominators, broadcast into the same layout (f32 matmul).
        denom = jnp.dot(p, mask, preferred_element_type=jnp.float32)        # (S, D)
        outs.append(o_un * pl.reciprocal(denom, approx=True))
    attn = jnp.concatenate(outs, axis=0)                                    # (ROWS, D)
    attn = jnp.dot(attn.astype(jnp.bfloat16), wo_ref[...],
                   preferred_element_type=jnp.float32) + bo_ref[...]

    # TODO(synk): nn.Dropout omitted (inference semantics -> identity)
    h1 = x + attn
    mu1 = jnp.mean(h1, axis=-1, keepdims=True)
    var1 = jnp.mean((h1 - mu1) ** 2, axis=-1, keepdims=True)
    h1 = (h1 - mu1) * jax.lax.rsqrt(var1 + LN_EPS) * g1_ref[...] + be1_ref[...]

    # --- position-wise feed-forward -----------------------------------------
    f = jnp.dot(h1.astype(jnp.bfloat16), w1_ref[...],
                preferred_element_type=jnp.float32) + b1_ref[...]
    f = jnp.maximum(f, 0.0)
    f = jnp.dot(f.astype(jnp.bfloat16), w2_ref[...],
                preferred_element_type=jnp.float32) + b2_ref[...]

    h2 = h1 + f
    mu2 = jnp.mean(h2, axis=-1, keepdims=True)
    var2 = jnp.mean((h2 - mu2) ** 2, axis=-1, keepdims=True)
    out = (h2 - mu2) * jax.lax.rsqrt(var2 + LN_EPS) * g2_ref[...] + be2_ref[...]

    o_ref[...] = out.astype(o_ref.dtype)


def encoder_layer(x, params, cos, sin):
    (wq, wk, wv, bq, bk, bv, wo, bo, g1, be1, w1, b1, w2, b2, g2, be2) = params

    # Host-side parameter prep: fuse Wq|Wk, fold in the attention scale, cast matmul
    # weights to bf16 (biases / LN params stay f32; accumulation is f32).
    scale = 1.0 / float(np.sqrt(HEAD_DIM))
    wqk = jnp.concatenate([wq * scale, wk], axis=1).astype(jnp.bfloat16)   # (D, 2D)
    bqk = jnp.concatenate([bq * scale, bk], axis=1)                        # (1, 2D)
    wv_b = wv.astype(jnp.bfloat16)
    wo_b = wo.astype(jnp.bfloat16)
    w1_b = w1.astype(jnp.bfloat16)
    w2_b = w2.astype(jnp.bfloat16)

    # Rotary constants with the rotate_half parity/sign folded in, shape (S, D).
    even = (jnp.arange(D) % 2) == 0
    sina = jnp.where(even, -sin, 0.0)        # multiplies x[i+1] on even lanes
    sinb = jnp.where(even, 0.0, sin)         # multiplies x[i-1] on odd lanes

    # Block-diagonal head mask: mask[h*S + t, d] = 1 iff head(d) == h.
    row_head = jnp.repeat(jnp.arange(NUM_HEADS), S)                        # (H*S,)
    col_head = jnp.arange(D) // HEAD_DIM                                   # (D,)
    mask = (row_head[:, None] == col_head[None, :]).astype(jnp.float32)    # (H*S, D)

    consts = (wqk, bqk, wv_b, bv, wo_b, bo, mask,
              g1, be1, w1_b, b1, w2_b, b2, g2, be2)
    inputs = (x.reshape(ROWS, D), cos, sina, sinb) + consts

    def full_spec(a):
        nd = a.ndim
        return pl.BlockSpec(a.shape, lambda i, _nd=nd: (0,) * _nd)

    out = pl.pallas_call(
        encoder_layer_kernel,
        out_shape=jax.ShapeDtypeStruct((ROWS, D), jnp.float32),
        grid_spec=pltpu.PrefetchScalarGridSpec(
            num_scalar_prefetch=0,
            grid=(1,),
            in_specs=[full_spec(a) for a in inputs],
            out_specs=pl.BlockSpec((ROWS, D), lambda i: (0, 0)),
        ),
        compiler_params=pltpu.CompilerParams(
            dimension_semantics=("arbitrary",)),
    )(*inputs)
    return out.reshape(B, S, D)


def ref_forward(x, params, cos, sin):
    """Pure-JAX f32 reference mirroring the PyTorch forward (eval mode)."""
    (wq, wk, wv, bq, bk, bv, wo, bo, g1, be1, w1, b1, w2, b2, g2, be2) = params
    xr = x.reshape(B, S, D // 2, 2)
    rot = jnp.stack([-xr[..., 1], xr[..., 0]], axis=-1).reshape(B, S, D)
    qk = x * cos + rot * sin
    q = qk @ wq + bq
    k = qk @ wk + bk
    v = x @ wv + bv

    def split(t):
        return t.reshape(B, S, NUM_HEADS, HEAD_DIM).transpose(0, 2, 1, 3)

    qh, kh, vh = split(q), split(k), split(v)
    s = jnp.einsum('bhqd,bhkd->bhqk', qh, kh) / jnp.sqrt(jnp.float32(HEAD_DIM))
    p = jax.nn.softmax(s, axis=-1)
    o = jnp.einsum('bhqk,bhkd->bhqd', p, vh).transpose(0, 2, 1, 3).reshape(B, S, D)
    attn = o @ wo + bo

    def ln(t, g, b):
        mu = jnp.mean(t, axis=-1, keepdims=True)
        var = jnp.mean((t - mu) ** 2, axis=-1, keepdims=True)
        return (t - mu) * jax.lax.rsqrt(var + LN_EPS) * g + b

    h1 = ln(x + attn, g1, be1)
    f = jnp.maximum(h1 @ w1 + b1, 0.0) @ w2 + b2
    return ln(h1 + f, g2, be2)


if __name__ == "__main__":
    key = jax.random.PRNGKey(0)
    keys = jax.random.split(key, 20)
    x = jax.random.normal(keys[0], (B, S, D), dtype=jnp.float32)

    def w(k, shape, scale=0.05):
        return (scale * jax.random.normal(k, shape)).astype(jnp.float32)

    wq = w(keys[1], (D, D)); wk = w(keys[2], (D, D)); wv = w(keys[3], (D, D))
    bq = w(keys[4], (1, D)); bk = w(keys[5], (1, D)); bv = w(keys[6], (1, D))
    wo = w(keys[7], (D, D)); bo = w(keys[8], (1, D))
    g1 = 1.0 + w(keys[9], (1, D)); be1 = w(keys[10], (1, D))
    w1 = w(keys[11], (D, D_FF)); b1 = w(keys[12], (1, D_FF))
    w2 = w(keys[13], (D_FF, D)); b2 = w(keys[14], (1, D))
    g2 = 1.0 + w(keys[15], (1, D)); be2 = w(keys[16], (1, D))
    params = (wq, wk, wv, bq, bk, bv, wo, bo, g1, be1, w1, b1, w2, b2, g2, be2)

    # RotaryEmbedding 'lang' freqs, then repeat '... n -> ... (n r)', r=2
    inv_freq = 1.0 / (10000.0 ** (jnp.arange(0, D, 2, dtype=jnp.float32) / D))
    fr = jnp.einsum('s,f->sf', jnp.arange(S, dtype=jnp.float32), inv_freq)
    fr = jnp.repeat(fr, 2, axis=-1)                                   # (S, D)
    cos = jnp.cos(fr)
    sin = jnp.sin(fr)

    out = jax.block_until_ready(encoder_layer(x, params, cos, sin))
    ref = ref_forward(x, params, cos, sin)
    # bf16 matmul operands (f32 accumulation) -> modestly looser tolerance vs. the f32 reference.
    np.testing.assert_allclose(np.asarray(out), np.asarray(ref), rtol=2e-2, atol=2e-2)
    print("KERNEL_OK")
</pallas_src>

<mosaic_0001>
module attributes {stable_mosaic.version = 11 : i64} {
  func.func @encoder_layer_kernel(%arg0: i32, %arg1: memref<16x64xf32, #tpu.memory_space<vmem>>, %arg2: memref<8x64xf32, #tpu.memory_space<vmem>>, %arg3: memref<8x64xf32, #tpu.memory_space<vmem>>, %arg4: memref<8x64xf32, #tpu.memory_space<vmem>>, %arg5: memref<64x128xbf16, #tpu.memory_space<vmem>>, %arg6: memref<1x128xf32, #tpu.memory_space<vmem>>, %arg7: memref<64x64xbf16, #tpu.memory_space<vmem>>, %arg8: memref<1x64xf32, #tpu.memory_space<vmem>>, %arg9: memref<64x64xbf16, #tpu.memory_space<vmem>>, %arg10: memref<1x64xf32, #tpu.memory_space<vmem>>, %arg11: memref<64x64xf32, #tpu.memory_space<vmem>>, %arg12: memref<1x64xf32, #tpu.memory_space<vmem>>, %arg13: memref<1x64xf32, #tpu.memory_space<vmem>>, %arg14: memref<64x128xbf16, #tpu.memory_space<vmem>>, %arg15: memref<1x128xf32, #tpu.memory_space<vmem>>, %arg16: memref<128x64xbf16, #tpu.memory_space<vmem>>, %arg17: memref<1x64xf32, #tpu.memory_space<vmem>>, %arg18: memref<1x64xf32, #tpu.memory_space<vmem>>, %arg19: memref<1x64xf32, #tpu.memory_space<vmem>>, %arg20: memref<16x64xf32, #tpu.memory_space<vmem>>) attributes {dimension_semantics = [#tpu.dimension_semantics<arbitrary>], iteration_bounds = array<i64: 1>, scalar_prefetch = 0 : i64, scratch_operands = 0 : i64, tpu.core_type = #tpu.core_type<tc>, window_params = [{pipeline_mode = #tpu.pipeline_mode<synchronous>, transform_indices = @transform_0, window_bounds = array<i64: 16, 64>}, {pipeline_mode = #tpu.pipeline_mode<synchronous>, transform_indices = @transform_1, window_bounds = array<i64: 8, 64>}, {pipeline_mode = #tpu.pipeline_mode<synchronous>, transform_indices = @transform_2, window_bounds = array<i64: 8, 64>}, {pipeline_mode = #tpu.pipeline_mode<synchronous>, transform_indices = @transform_3, window_bounds = array<i64: 8, 64>}, {pipeline_mode = #tpu.pipeline_mode<synchronous>, transform_indices = @transform_4, window_bounds = array<i64: 64, 128>}, {pipeline_mode = #tpu.pipeline_mode<synchronous>, transform_indices = @transform_5, window_bounds = array<i64: 1, 128>}, {pipeline_mode = #tpu.pipeline_mode<synchronous>, transform_indices = @transform_6, window_bounds = array<i64: 64, 64>}, {pipeline_mode = #tpu.pipeline_mode<synchronous>, transform_indices = @transform_7, window_bounds = array<i64: 1, 64>}, {pipeline_mode = #tpu.pipeline_mode<synchronous>, transform_indices = @transform_8, window_bounds = array<i64: 64, 64>}, {pipeline_mode = #tpu.pipeline_mode<synchronous>, transform_indices = @transform_9, window_bounds = array<i64: 1, 64>}, {pipeline_mode = #tpu.pipeline_mode<synchronous>, transform_indices = @transform_10, window_bounds = array<i64: 64, 64>}, {pipeline_mode = #tpu.pipeline_mode<synchronous>, transform_indices = @transform_11, window_bounds = array<i64: 1, 64>}, {pipeline_mode = #tpu.pipeline_mode<synchronous>, transform_indices = @transform_12, window_bounds = array<i64: 1, 64>}, {pipeline_mode = #tpu.pipeline_mode<synchronous>, transform_indices = @transform_13, window_bounds = array<i64: 64, 128>}, {pipeline_mode = #tpu.pipeline_mode<synchronous>, transform_indices = @transform_14, window_bounds = array<i64: 1, 128>}, {pipeline_mode = #tpu.pipeline_mode<synchronous>, transform_indices = @transform_15, window_bounds = array<i64: 128, 64>}, {pipeline_mode = #tpu.pipeline_mode<synchronous>, transform_indices = @transform_16, window_bounds = array<i64: 1, 64>}, {pipeline_mode = #tpu.pipeline_mode<synchronous>, transform_indices = @transform_17, window_bounds = array<i64: 1, 64>}, {pipeline_mode = #tpu.pipeline_mode<synchronous>, transform_indices = @transform_18, window_bounds = array<i64: 1, 64>}, {pipeline_mode = #tpu.pipeline_mode<synchronous>, transform_indices = @transform_19, window_bounds = array<i64: 16, 64>}]} {
    %c0 = arith.constant 0 : index
    %c0_0 = arith.constant 0 : index
    %0 = vector.load %arg1[%c0, %c0_0] : memref<16x64xf32, #tpu.memory_space<vmem>>, vector<16x64xf32>
    %c0_1 = arith.constant 0 : index
    %c0_2 = arith.constant 0 : index
    %1 = vector.load %arg2[%c0_1, %c0_2] : memref<8x64xf32, #tpu.memory_space<vmem>>, vector<8x64xf32>
    %2 = tpu.concatenate %1, %1 in 0 : vector<8x64xf32>, vector<8x64xf32> -> vector<16x64xf32>
    %c0_3 = arith.constant 0 : index
    %c0_4 = arith.constant 0 : index
    %3 = vector.load %arg3[%c0_3, %c0_4] : memref<8x64xf32, #tpu.memory_space<vmem>>, vector<8x64xf32>
    %4 = tpu.concatenate %3, %3 in 0 : vector<8x64xf32>, vector<8x64xf32> -> vector<16x64xf32>
    %c0_5 = arith.constant 0 : index
    %c0_6 = arith.constant 0 : index
    %5 = vector.load %arg4[%c0_5, %c0_6] : memref<8x64xf32, #tpu.memory_space<vmem>>, vector<8x64xf32>
    %6 = tpu.concatenate %5, %5 in 0 : vector<8x64xf32>, vector<8x64xf32> -> vector<16x64xf32>
    %c63_i32 = arith.constant 63 : i32
    %7 = tpu.dynamic_rotate %0 by %c63_i32 dim 1 : vector<16x64xf32>, i32 -> vector<16x64xf32>
    %c1_i32 = arith.constant 1 : i32
    %8 = tpu.dynamic_rotate %0 by %c1_i32 dim 1 : vector<16x64xf32>, i32 -> vector<16x64xf32>
    %9 = arith.mulf %0, %2 : vector<16x64xf32>
    %10 = arith.mulf %7, %4 : vector<16x64xf32>
    %11 = arith.addf %9, %10 : vector<16x64xf32>
    %12 = arith.mulf %8, %6 : vector<16x64xf32>
    %13 = arith.addf %11, %12 : vector<16x64xf32>
    %14 = arith.truncf %13 : vector<16x64xf32> to vector<16x64xbf16>
    %c0_7 = arith.constant 0 : index
    %c0_8 = arith.constant 0 : index
    %15 = vector.load %arg5[%c0_7, %c0_8] : memref<64x128xbf16, #tpu.memory_space<vmem>>, vector<64x128xbf16>
    %cst = arith.constant dense<0.000000e+00> : vector<16x128xf32>
    %16 = tpu.matmul %14, %15, %cst {dimension_numbers = #tpu.dot_dimension_numbers<[1], [0], [0], [1], [0, 0, 1, 1], [], []>} : vector<16x64xbf16>, vector<64x128xbf16>, vector<16x128xf32> -> vector<16x128xf32>
    %c0_9 = arith.constant 0 : index
    %c0_10 = arith.constant 0 : index
    %17 = vector.load %arg6[%c0_9, %c0_10] : memref<1x128xf32, #tpu.memory_space<vmem>>, vector<1x128xf32>
    %18 = vector.broadcast %17 : vector<1x128xf32> to vector<16x128xf32>
    %19 = arith.addf %16, %18 : vector<16x128xf32>
    %20 = arith.truncf %0 : vector<16x64xf32> to vector<16x64xbf16>
    %c0_11 = arith.constant 0 : index
    %c0_12 = arith.constant 0 : index
    %21 = vector.load %arg7[%c0_11, %c0_12] : memref<64x64xbf16, #tpu.memory_space<vmem>>, vector<64x64xbf16>
    %cst_13 = arith.constant dense<0.000000e+00> : vector<16x64xf32>
    %22 = tpu.matmul %20, %21, %cst_13 {dimension_numbers = #tpu.dot_dimension_numbers<[1], [0], [0], [1], [0, 0, 1, 1], [], []>} : vector<16x64xbf16>, vector<64x64xbf16>, vector<16x64xf32> -> vector<16x64xf32>
    %c0_14 = arith.constant 0 : index
    %c0_15 = arith.constant 0 : index
    %23 = vector.load %arg8[%c0_14, %c0_15] : memref<1x64xf32, #tpu.memory_space<vmem>>, vector<1x64xf32>
    %24 = vector.broadcast %23 : vector<1x64xf32> to vector<16x64xf32>
    %25 = arith.addf %22, %24 : vector<16x64xf32>
    %26 = vector.extract_strided_slice %19 {offsets = [0, 0], sizes = [16, 64], strides = [1, 1]} : vector<16x128xf32> to vector<16x64xf32>
    %27 = vector.extract_strided_slice %19 {offsets = [0, 64], sizes = [16, 64], strides = [1, 1]} : vector<16x128xf32> to vector<16x64xf32>
    %c0_16 = arith.constant 0 : index
    %c0_17 = arith.constant 0 : index
    %28 = vector.load %arg11[%c0_16, %c0_17] : memref<64x64xf32, #tpu.memory_space<vmem>>, vector<64x64xf32>
    %29 = vector.extract_strided_slice %26 {offsets = [0, 0], sizes = [8, 64], strides = [1, 1]} : vector<16x64xf32> to vector<8x64xf32>
    %30 = arith.truncf %29 : vector<8x64xf32> to vector<8x64xbf16>
    %31 = vector.extract_strided_slice %27 {offsets = [0, 0], sizes = [8, 64], strides = [1, 1]} : vector<16x64xf32> to vector<8x64xf32>
    %32 = tpu.concatenate %31, %31, %31, %31, %31, %31, %31, %31 in 0 : vector<8x64xf32>, vector<8x64xf32>, vector<8x64xf32>, vector<8x64xf32>, vector<8x64xf32>, vector<8x64xf32>, vector<8x64xf32>, vector<8x64xf32> -> vector<64x64xf32>
    %33 = arith.mulf %32, %28 : vector<64x64xf32>
    %34 = arith.truncf %33 : vector<64x64xf32> to vector<64x64xbf16>
    %35 = vector.extract_strided_slice %25 {offsets = [0, 0], sizes = [8, 64], strides = [1, 1]} : vector<16x64xf32> to vector<8x64xf32>
    %36 = tpu.concatenate %35, %35, %35, %35, %35, %35, %35, %35 in 0 : vector<8x64xf32>, vector<8x64xf32>, vector<8x64xf32>, vector<8x64xf32>, vector<8x64xf32>, vector<8x64xf32>, vector<8x64xf32>, vector<8x64xf32> -> vector<64x64xf32>
    %37 = arith.mulf %36, %28 : vector<64x64xf32>
    %38 = arith.truncf %37 : vector<64x64xf32> to vector<64x64xbf16>
    "tpu.trace_start"() <{level = 10 : i32, message = "sd,ud->su"}> : () -> ()
    %cst_18 = arith.constant dense<0.000000e+00> : vector<8x64xf32>
    %39 = tpu.matmul %30, %34, %cst_18 {dimension_numbers = #tpu.dot_dimension_numbers<[1], [1], [0], [0], [0, 0, 1, 0], [], []>} : vector<8x64xbf16>, vector<64x64xbf16>, vector<8x64xf32> -> vector<8x64xf32>
    "tpu.trace_stop"() : () -> ()
    %cst_19 = arith.constant dense<0xFF800000> : vector<8xf32>
    %40 = vector.multi_reduction <maximumf>, %39, %cst_19 [1] : vector<8x64xf32> to vector<8xf32>
    %41 = vector.shape_cast %40 : vector<8xf32> to vector<8x1xf32>
    %42 = vector.broadcast %41 : vector<8x1xf32> to vector<8x64xf32>
    %43 = arith.subf %39, %42 : vector<8x64xf32>
    %44 = math.exp %43 : vector<8x64xf32>
    %45 = arith.truncf %44 : vector<8x64xf32> to vector<8x64xbf16>
    %cst_20 = arith.constant dense<0.000000e+00> : vector<8x64xf32>
    %46 = tpu.matmul %45, %38, %cst_20 {dimension_numbers = #tpu.dot_dimension_numbers<[1], [0], [0], [1], [0, 0, 1, 1], [], []>} : vector<8x64xbf16>, vector<64x64xbf16>, vector<8x64xf32> -> vector<8x64xf32>
    %cst_21 = arith.constant dense<0.000000e+00> : vector<8x64xf32>
    %47 = tpu.matmul %44, %28, %cst_21 {dimension_numbers = #tpu.dot_dimension_numbers<[1], [0], [0], [1], [0, 0, 1, 1], [], []>} : vector<8x64xf32>, vector<64x64xf32>, vector<8x64xf32> -> vector<8x64xf32>
    %48 = tpu.reciprocal %47 {approx = true} : vector<8x64xf32> -> vector<8x64xf32>
    %49 = arith.mulf %46, %48 : vector<8x64xf32>
    %50 = vector.extract_strided_slice %26 {offsets = [8, 0], sizes = [8, 64], strides = [1, 1]} : vector<16x64xf32> to vector<8x64xf32>
    %51 = arith.truncf %50 : vector<8x64xf32> to vector<8x64xbf16>
    %52 = vector.extract_strided_slice %27 {offsets = [8, 0], sizes = [8, 64], strides = [1, 1]} : vector<16x64xf32> to vector<8x64xf32>
    %53 = tpu.concatenate %52, %52, %52, %52, %52, %52, %52, %52 in 0 : vector<8x64xf32>, vector<8x64xf32>, vector<8x64xf32>, vector<8x64xf32>, vector<8x64xf32>, vector<8x64xf32>, vector<8x64xf32>, vector<8x64xf32> -> vector<64x64xf32>
    %54 = arith.mulf %53, %28 : vector<64x64xf32>
    %55 = arith.truncf %54 : vector<64x64xf32> to vector<64x64xbf16>
    %56 = vector.extract_strided_slice %25 {offsets = [8, 0], sizes = [8, 64], strides = [1, 1]} : vector<16x64xf32> to vector<8x64xf32>
    %57 = tpu.concatenate %56, %56, %56, %56, %56, %56, %56, %56 in 0 : vector<8x64xf32>, vector<8x64xf32>, vector<8x64xf32>, vector<8x64xf32>, vector<8x64xf32>, vector<8x64xf32>, vector<8x64xf32>, vector<8x64xf32> -> vector<64x64xf32>
    %58 = arith.mulf %57, %28 : vector<64x64xf32>
    %59 = arith.truncf %58 : vector<64x64xf32> to vector<64x64xbf16>
    "tpu.trace_start"() <{level = 10 : i32, message = "sd,ud->su"}> : () -> ()
    %cst_22 = arith.constant dense<0.000000e+00> : vector<8x64xf32>
    %60 = tpu.matmul %51, %55, %cst_22 {dimension_numbers = #tpu.dot_dimension_numbers<[1], [1], [0], [0], [0, 0, 1, 0], [], []>} : vector<8x64xbf16>, vector<64x64xbf16>, vector<8x64xf32> -> vector<8x64xf32>
    "tpu.trace_stop"() : () -> ()
    %cst_23 = arith.constant dense<0xFF800000> : vector<8xf32>
    %61 = vector.multi_reduction <maximumf>, %60, %cst_23 [1] : vector<8x64xf32> to vector<8xf32>
    %62 = vector.shape_cast %61 : vector<8xf32> to vector<8x1xf32>
    %63 = vector.broadcast %62 : vector<8x1xf32> to vector<8x64xf32>
    %64 = arith.subf %60, %63 : vector<8x64xf32>
    %65 = math.exp %64 : vector<8x64xf32>
    %66 = arith.truncf %65 : vector<8x64xf32> to vector<8x64xbf16>
    %cst_24 = arith.constant dense<0.000000e+00> : vector<8x64xf32>
    %67 = tpu.matmul %66, %59, %cst_24 {dimension_numbers = #tpu.dot_dimension_numbers<[1], [0], [0], [1], [0, 0, 1, 1], [], []>} : vector<8x64xbf16>, vector<64x64xbf16>, vector<8x64xf32> -> vector<8x64xf32>
    %cst_25 = arith.constant dense<0.000000e+00> : vector<8x64xf32>
    %68 = tpu.matmul %65, %28, %cst_25 {dimension_numbers = #tpu.dot_dimension_numbers<[1], [0], [0], [1], [0, 0, 1, 1], [], []>} : vector<8x64xf32>, vector<64x64xf32>, vector<8x64xf32> -> vector<8x64xf32>
    %69 = tpu.reciprocal %68 {approx = true} : vector<8x64xf32> -> vector<8x64xf32>
    %70 = arith.mulf %67, %69 : vector<8x64xf32>
    %71 = tpu.concatenate %49, %70 in 0 : vector<8x64xf32>, vector<8x64xf32> -> vector<16x64xf32>
    %72 = arith.truncf %71 : vector<16x64xf32> to vector<16x64xbf16>
    %c0_26 = arith.constant 0 : index
    %c0_27 = arith.constant 0 : index
    %73 = vector.load %arg9[%c0_26, %c0_27] : memref<64x64xbf16, #tpu.memory_space<vmem>>, vector<64x64xbf16>
    %cst_28 = arith.constant dense<0.000000e+00> : vector<16x64xf32>
    %74 = tpu.matmul %72, %73, %cst_28 {dimension_numbers = #tpu.dot_dimension_numbers<[1], [0], [0], [1], [0, 0, 1, 1], [], []>} : vector<16x64xbf16>, vector<64x64xbf16>, vector<16x64xf32> -> vector<16x64xf32>
    %c0_29 = arith.constant 0 : index
    %c0_30 = arith.constant 0 : index
    %75 = vector.load %arg10[%c0_29, %c0_30] : memref<1x64xf32, #tpu.memory_space<vmem>>, vector<1x64xf32>
    %76 = vector.broadcast %75 : vector<1x64xf32> to vector<16x64xf32>
    %77 = arith.addf %74, %76 : vector<16x64xf32>
    %78 = arith.addf %0, %77 : vector<16x64xf32>
    %cst_31 = arith.constant dense<0.000000e+00> : vector<16xf32>
    %79 = vector.multi_reduction <add>, %78, %cst_31 [1] : vector<16x64xf32> to vector<16xf32>
    %80 = vector.shape_cast %79 : vector<16xf32> to vector<16x1xf32>
    %cst_32 = arith.constant 6.400000e+01 : f32
    %81 = vector.broadcast %cst_32 : f32 to vector<16x1xf32>
    %82 = arith.divf %80, %81 : vector<16x1xf32>
    %83 = vector.broadcast %82 : vector<16x1xf32> to vector<16x64xf32>
    %84 = arith.subf %78, %83 : vector<16x64xf32>
    %85 = arith.mulf %84, %84 : vector<16x64xf32>
    %cst_33 = arith.constant dense<0.000000e+00> : vector<16xf32>
    %86 = vector.multi_reduction <add>, %85, %cst_33 [1] : vector<16x64xf32> to vector<16xf32>
    %87 = vector.shape_cast %86 : vector<16xf32> to vector<16x1xf32>
    %cst_34 = arith.constant 6.400000e+01 : f32
    %88 = vector.broadcast %cst_34 : f32 to vector<16x1xf32>
    %89 = arith.divf %87, %88 : vector<16x1xf32>
    %90 = vector.broadcast %82 : vector<16x1xf32> to vector<16x64xf32>
    %91 = arith.subf %78, %90 : vector<16x64xf32>
    %cst_35 = arith.constant 9.99999974E-6 : f32
    %92 = vector.broadcast %cst_35 : f32 to vector<16x1xf32>
    %93 = arith.addf %89, %92 : vector<16x1xf32>
    %94 = math.rsqrt %93 : vector<16x1xf32>
    %95 = vector.broadcast %94 : vector<16x1xf32> to vector<16x64xf32>
    %96 = arith.mulf %91, %95 : vector<16x64xf32>
    %c0_36 = arith.constant 0 : index
    %c0_37 = arith.constant 0 : index
    %97 = vector.load %arg12[%c0_36, %c0_37] : memref<1x64xf32, #tpu.memory_space<vmem>>, vector<1x64xf32>
    %98 = vector.broadcast %97 : vector<1x64xf32> to vector<16x64xf32>
    %99 = arith.mulf %96, %98 : vector<16x64xf32>
    %c0_38 = arith.constant 0 : index
    %c0_39 = arith.constant 0 : index
    %100 = vector.load %arg13[%c0_38, %c0_39] : memref<1x64xf32, #tpu.memory_space<vmem>>, vector<1x64xf32>
    %101 = vector.broadcast %100 : vector<1x64xf32> to vector<16x64xf32>
    %102 = arith.addf %99, %101 : vector<16x64xf32>
    %103 = arith.truncf %102 : vector<16x64xf32> to vector<16x64xbf16>
    %c0_40 = arith.constant 0 : index
    %c0_41 = arith.constant 0 : index
    %104 = vector.load %arg14[%c0_40, %c0_41] : memref<64x128xbf16, #tpu.memory_space<vmem>>, vector<64x128xbf16>
    %cst_42 = arith.constant dense<0.000000e+00> : vector<16x128xf32>
    %105 = tpu.matmul %103, %104, %cst_42 {dimension_numbers = #tpu.dot_dimension_numbers<[1], [0], [0], [1], [0, 0, 1, 1], [], []>} : vector<16x64xbf16>, vector<64x128xbf16>, vector<16x128xf32> -> vector<16x128xf32>
    %c0_43 = arith.constant 0 : index
    %c0_44 = arith.constant 0 : index
    %106 = vector.load %arg15[%c0_43, %c0_44] : memref<1x128xf32, #tpu.memory_space<vmem>>, vector<1x128xf32>
    %107 = vector.broadcast %106 : vector<1x128xf32> to vector<16x128xf32>
    %108 = arith.addf %105, %107 : vector<16x128xf32>
    %cst_45 = arith.constant 0.000000e+00 : f32
    %109 = vector.broadcast %cst_45 : f32 to vector<16x128xf32>
    %110 = arith.maximumf %108, %109 : vector<16x128xf32>
    %111 = arith.truncf %110 : vector<16x128xf32> to vector<16x128xbf16>
    %c0_46 = arith.constant 0 : index
    %c0_47 = arith.constant 0 : index
    %112 = vector.load %arg16[%c0_46, %c0_47] : memref<128x64xbf16, #tpu.memory_space<vmem>>, vector<128x64xbf16>
    %cst_48 = arith.constant dense<0.000000e+00> : vector<16x64xf32>
    %113 = tpu.matmul %111, %112, %cst_48 {dimension_numbers = #tpu.dot_dimension_numbers<[1], [0], [0], [1], [0, 0, 1, 1], [], []>} : vector<16x128xbf16>, vector<128x64xbf16>, vector<16x64xf32> -> vector<16x64xf32>
    %c0_49 = arith.constant 0 : index
    %c0_50 = arith.constant 0 : index
    %114 = vector.load %arg17[%c0_49, %c0_50] : memref<1x64xf32, #tpu.memory_space<vmem>>, vector<1x64xf32>
    %115 = vector.broadcast %114 : vector<1x64xf32> to vector<16x64xf32>
    %116 = arith.addf %113, %115 : vector<16x64xf32>
    %117 = arith.addf %102, %116 : vector<16x64xf32>
    %cst_51 = arith.constant dense<0.000000e+00> : vector<16xf32>
    %118 = vector.multi_reduction <add>, %117, %cst_51 [1] : vector<16x64xf32> to vector<16xf32>
    %119 = vector.shape_cast %118 : vector<16xf32> to vector<16x1xf32>
    %cst_52 = arith.constant 6.400000e+01 : f32
    %120 = vector.broadcast %cst_52 : f32 to vector<16x1xf32>
    %121 = arith.divf %119, %120 : vector<16x1xf32>
    %122 = vector.broadcast %121 : vector<16x1xf32> to vector<16x64xf32>
    %123 = arith.subf %117, %122 : vector<16x64xf32>
    %124 = arith.mulf %123, %123 : vector<16x64xf32>
    %cst_53 = arith.constant dense<0.000000e+00> : vector<16xf32>
    %125 = vector.multi_reduction <add>, %124, %cst_53 [1] : vector<16x64xf32> to vector<16xf32>
    %126 = vector.shape_cast %125 : vector<16xf32> to vector<16x1xf32>
    %cst_54 = arith.constant 6.400000e+01 : f32
    %127 = vector.broadcast %cst_54 : f32 to vector<16x1xf32>
    %128 = arith.divf %126, %127 : vector<16x1xf32>
    %129 = vector.broadcast %121 : vector<16x1xf32> to vector<16x64xf32>
    %130 = arith.subf %117, %129 : vector<16x64xf32>
    %cst_55 = arith.constant 9.99999974E-6 : f32
    %131 = vector.broadcast %cst_55 : f32 to vector<16x1xf32>
    %132 = arith.addf %128, %131 : vector<16x1xf32>
    %133 = math.rsqrt %132 : vector<16x1xf32>
    %134 = vector.broadcast %133 : vector<16x1xf32> to vector<16x64xf32>
    %135 = arith.mulf %130, %134 : vector<16x64xf32>
    %c0_56 = arith.constant 0 : index
    %c0_57 = arith.constant 0 : index
    %136 = vector.load %arg18[%c0_56, %c0_57] : memref<1x64xf32, #tpu.memory_space<vmem>>, vector<1x64xf32>
    %137 = vector.broadcast %136 : vector<1x64xf32> to vector<16x64xf32>
    %138 = arith.mulf %135, %137 : vector<16x64xf32>
    %c0_58 = arith.constant 0 : index
    %c0_59 = arith.constant 0 : index
    %139 = vector.load %arg19[%c0_58, %c0_59] : memref<1x64xf32, #tpu.memory_space<vmem>>, vector<1x64xf32>
    %140 = vector.broadcast %139 : vector<1x64xf32> to vector<16x64xf32>
    %141 = arith.addf %138, %140 : vector<16x64xf32>
    %c0_60 = arith.constant 0 : index
    %c0_61 = arith.constant 0 : index
    %142 = vector.load %arg20[%c0_60, %c0_61] : memref<16x64xf32, #tpu.memory_space<vmem>>, vector<16x64xf32>
    tpu.vector_store %arg20[%c0_60, %c0_61], %141 {strides = array<i32>} : memref<16x64xf32, #tpu.memory_space<vmem>>, vector<16x64xf32>,
    return
  }
  func.func @transform_0(%arg0: i32) -> (i32, i32) {
    %c0_i32 = arith.constant 0 : i32
    %c0_i32_0 = arith.constant 0 : i32
    %c0_i32_1 = arith.constant 0 : i32
    return %c0_i32, %c0_i32_0 : i32, i32
  }
  func.func @transform_1(%arg0: i32) -> (i32, i32) {
    %c0_i32 = arith.constant 0 : i32
    %c0_i32_0 = arith.constant 0 : i32
    %c0_i32_1 = arith.constant 0 : i32
    return %c0_i32, %c0_i32_0 : i32, i32
  }
  func.func @transform_2(%arg0: i32) -> (i32, i32) {
    %c0_i32 = arith.constant 0 : i32
    %c0_i32_0 = arith.constant 0 : i32
    %c0_i32_1 = arith.constant 0 : i32
    return %c0_i32, %c0_i32_0 : i32, i32
  }
  func.func @transform_3(%arg0: i32) -> (i32, i32) {
    %c0_i32 = arith.constant 0 : i32
    %c0_i32_0 = arith.constant 0 : i32
    %c0_i32_1 = arith.constant 0 : i32
    return %c0_i32, %c0_i32_0 : i32, i32
  }
  func.func @transform_4(%arg0: i32) -> (i32, i32) {
    %c0_i32 = arith.constant 0 : i32
    %c0_i32_0 = arith.constant 0 : i32
    %c0_i32_1 = arith.constant 0 : i32
    return %c0_i32, %c0_i32_0 : i32, i32
  }
  func.func @transform_5(%arg0: i32) -> (i32, i32) {
    %c0_i32 = arith.constant 0 : i32
    %c0_i32_0 = arith.constant 0 : i32
    %c0_i32_1 = arith.constant 0 : i32
    return %c0_i32, %c0_i32_0 : i32, i32
  }
  func.func @transform_6(%arg0: i32) -> (i32, i32) {
    %c0_i32 = arith.constant 0 : i32
    %c0_i32_0 = arith.constant 0 : i32
    %c0_i32_1 = arith.constant 0 : i32
    return %c0_i32, %c0_i32_0 : i32, i32
  }
  func.func @transform_7(%arg0: i32) -> (i32, i32) {
    %c0_i32 = arith.constant 0 : i32
    %c0_i32_0 = arith.constant 0 : i32
    %c0_i32_1 = arith.constant 0 : i32
    return %c0_i32, %c0_i32_0 : i32, i32
  }
  func.func @transform_8(%arg0: i32) -> (i32, i32) {
    %c0_i32 = arith.constant 0 : i32
    %c0_i32_0 = arith.constant 0 : i32
    %c0_i32_1 = arith.constant 0 : i32
    return %c0_i32, %c0_i32_0 : i32, i32
  }
  func.func @transform_9(%arg0: i32) -> (i32, i32) {
    %c0_i32 = arith.constant 0 : i32
    %c0_i32_0 = arith.constant 0 : i32
    %c0_i32_1 = arith.constant 0 : i32
    return %c0_i32, %c0_i32_0 : i32, i32
  }
  func.func @transform_10(%arg0: i32) -> (i32, i32) {
    %c0_i32 = arith.constant 0 : i32
    %c0_i32_0 = arith.constant 0 : i32
    %c0_i32_1 = arith.constant 0 : i32
    return %c0_i32, %c0_i32_0 : i32, i32
  }
  func.func @transform_11(%arg0: i32) -> (i32, i32) {
    %c0_i32 = arith.constant 0 : i32
    %c0_i32_0 = arith.constant 0 : i32
    %c0_i32_1 = arith.constant 0 : i32
    return %c0_i32, %c0_i32_0 : i32, i32
  }
  func.func @transform_12(%arg0: i32) -> (i32, i32) {
    %c0_i32 = arith.constant 0 : i32
    %c0_i32_0 = arith.constant 0 : i32
    %c0_i32_1 = arith.constant 0 : i32
    return %c0_i32, %c0_i32_0 : i32, i32
  }
  func.func @transform_13(%arg0: i32) -> (i32, i32) {
    %c0_i32 = arith.constant 0 : i32
    %c0_i32_0 = arith.constant 0 : i32
    %c0_i32_1 = arith.constant 0 : i32
    return %c0_i32, %c0_i32_0 : i32, i32
  }
  func.func @transform_14(%arg0: i32) -> (i32, i32) {
    %c0_i32 = arith.constant 0 : i32
    %c0_i32_0 = arith.constant 0 : i32
    %c0_i32_1 = arith.constant 0 : i32
    return %c0_i32, %c0_i32_0 : i32, i32
  }
  func.func @transform_15(%arg0: i32) -> (i32, i32) {
    %c0_i32 = arith.constant 0 : i32
    %c0_i32_0 = arith.constant 0 : i32
    %c0_i32_1 = arith.constant 0 : i32
    return %c0_i32, %c0_i32_0 : i32, i32
  }
  func.func @transform_16(%arg0: i32) -> (i32, i32) {
    %c0_i32 = arith.constant 0 : i32
    %c0_i32_0 = arith.constant 0 : i32
    %c0_i32_1 = arith.constant 0 : i32
    return %c0_i32, %c0_i32_0 : i32, i32
  }
  func.func @transform_17(%arg0: i32) -> (i32, i32) {
    %c0_i32 = arith.constant 0 : i32
    %c0_i32_0 = arith.constant 0 : i32
    %c0_i32_1 = arith.constant 0 : i32
    return %c0_i32, %c0_i32_0 : i32, i32
  }
  func.func @transform_18(%arg0: i32) -> (i32, i32) {
    %c0_i32 = arith.constant 0 : i32
    %c0_i32_0 = arith.constant 0 : i32
    %c0_i32_1 = arith.constant 0 : i32
    return %c0_i32, %c0_i32_0 : i32, i32
  }
  func.func @transform_19(%arg0: i32) -> (i32, i32) {
    %c0_i32 = arith.constant 0 : i32
    %c0_i32_0 = arith.constant 0 : i32
    %c0_i32_1 = arith.constant 0 : i32
    return %c0_i32, %c0_i32_0 : i32, i32
  }
}

</mosaic_0001>

<bundles_post_ra>
// kernel: tpu_custom_call.1
= control target key start
LH: loop header
LB: loop body
LE: loop exit
PB: predicated region body
PF: predicated region fallthrough
CT: control target
= control target key end

     0   :  { %s1783_s0 = inlined_call_operand.hbm [shape: f32[16,64], index: 0, kind: input, shape index: {}]   ;;  %s1784_s1 = inlined_call_operand.vmem [shape: f32[8,64], index: 1, kind: input, shape index: {}]   ;;  %s1785_s2 = inlined_call_operand.hbm [shape: f32[8,64], index: 2, kind: input, shape index: {}]   ;;  %s1786_s3 = inlined_call_operand.hbm [shape: f32[8,64], index: 3, kind: input, shape index: {}]   ;;  %s1787_s4 = inlined_call_operand.vmem [shape: bf16[64,128], index: 4, kind: input, shape index: {}]   ;;  %s1788_s5 = inlined_call_operand.vmem [shape: f32[1,128], index: 5, kind: input, shape index: {}]   ;;  %s1789_s6 = inlined_call_operand.hbm [shape: bf16[64,64], index: 6, kind: input, shape index: {}]   ;;  %s1790_s7 = inlined_call_operand.hbm [shape: f32[1,64], index: 7, kind: input, shape index: {}]   ;;  %s1791_s8 = inlined_call_operand.hbm [shape: bf16[64,64], index: 8, kind: input, shape index: {}]   ;;  %s1792_s9 = inlined_call_operand.hbm [shape: f32[1,64], index: 9, kind: input, shape index: {}]   ;;  %s1793_s10 = inlined_call_operand.vmem [shape: f32[64,64], index: 10, kind: input, shape index: {}]   ;;  %s1794_s11 = inlined_call_operand.hbm [shape: f32[1,64], index: 11, kind: input, shape index: {}]   ;;  %s1795_s12 = inlined_call_operand.vmem [shape: f32[1,64], index: 12, kind: input, shape index: {}]   ;;  %s1796_s13 = inlined_call_operand.hbm [shape: bf16[64,128], index: 13, kind: input, shape index: {}]   ;;  %s1797_s14 = inlined_call_operand.vmem [shape: f32[1,128], index: 14, kind: input, shape index: {}]   ;;  %s1798_s15 = inlined_call_operand.vmem [shape: bf16[128,64], index: 15, kind: input, shape index: {}]   ;;  %s1799_s16 = inlined_call_operand.vmem [shape: f32[1,64], index: 16, kind: input, shape index: {}]   ;;  %s1800_s17 = inlined_call_operand.vmem [shape: f32[1,64], index: 17, kind: input, shape index: {}]   ;;  %s1801_s18 = inlined_call_operand.vmem [shape: f32[1,64], index: 18, kind: input, shape index: {}]   ;;  %s1802_s19 = inlined_call_operand.hbm [shape: f32[16,64], index: 19, kind: output, shape index: {}]  }
   0x1   :  { %1803 = sst [smem:[#allocation24_spill]] %s1783_s0 }
   0x2   :  { %1804 = sst [smem:[#allocation25_spill]] %s1784_s1 }
   0x3   :  { %1805 = sst [smem:[#allocation26_spill]] %s1785_s2 }
   0x4   :  { %1806 = sst [smem:[#allocation27_spill]] %s1786_s3 }
   0x5   :  { %1807 = sst [smem:[#allocation28_spill]] %s1802_s19 }
   0x6   :  { %24 = vsyncpa [#allocation3], 0 }
   0x7   :  { %25 = vsyncpa [#allocation6], 0 }
   0x8   :  { %26 = vsyncpa [#allocation9], 0 }
   0x9   :  { %27 = vsyncpa [#allocation12], 0 }
   0xa   :  { %28 = vsyncpa [#allocation15], 0  ;;  %s1808_s20 = sld [smem:[#allocation26_spill]] }
  0x10   :  { %s50_s21 = sshll.u32 %s1808_s20, 4  ;;  %s51_s21 = int_to_ptr.hbm [resolvable:$true] %s50_s21 }
  0x11   :  { %29 = vsyncpa [#allocation4], 0  ;;  %s1390_s1 = smov [#allocation5]   ;;  %s75_s24 = sshll.u32 %s1789_s6, 4  ;;  %s76_s24 = int_to_ptr.hbm [resolvable:$true] %s75_s24 }
  0x12   :  { %s52_s22 = sshll.u32 %s1390_s1, 4  ;;  %s1391_s25 = smov [#allocation8]   ;;  %s53_s22 = int_to_ptr.vmem [resolvable:$true] %s52_s22 }
  0x13   :  { %55 = dma.hbm_to_vmem [thread:$0]  %s51_s21, 128, %s53_s22, [#allocation6]  }
  0x14   :  { %s77_s3 = sshll.u32 %s1391_s25, 4  ;;  %s1392_s26 = smov 64   ;;  %s78_s3 = int_to_ptr.vmem [resolvable:$true] %s77_s3 }
  0x15   :  { %s1393_s27 = smov 4   ;;  %s99_s0 = sshll.u32 %s1791_s8, 4  ;;  %s100_s0 = int_to_ptr.hbm [resolvable:$true] %s99_s0 }
  0x16   :  { %83 = dma.hbm_to_vmem [thread:$0]  %s76_s24, 512, %s78_s3, [#allocation9], %s1392_s26, %s1392_s26, %s1393_s27  }
  0x17   :  { %s1394_s30 = smov [#allocation11]   ;;  %s126_s1 = sshll.u32 %s1794_s11, 4  ;;  %s127_s1 = int_to_ptr.hbm [resolvable:$true] %s126_s1 }
  0x18   :  { %s101_s20 = sshll.u32 %s1394_s30, 4  ;;  %s1395_s22 = smov [#allocation14]   ;;  %s102_s20 = int_to_ptr.vmem [resolvable:$true] %s101_s20 }
  0x19   :  { %107 = dma.hbm_to_vmem [thread:$0]  %s100_s0, 512, %s102_s20, [#allocation12], %s1392_s26, %s1392_s26, %s1393_s27  }
  0x1a   :  { %s128_s2 = sshll.u32 %s1395_s22, 4  ;;  %s1809_s25 = sld [smem:[#allocation24_spill]]  ;;  %s129_s2 = int_to_ptr.vmem [resolvable:$true] %s128_s2 }
  0x1b   :  { %131 = dma.hbm_to_vmem [thread:$0]  %s127_s1, 16, %s129_s2, [#allocation15]  }
  0x1c   :  { %s1396_s8 = smov [#allocation2]   ;;  %s1810_s11 = sld [smem:[#allocation27_spill]] }
  0x1d   :  { %s36_s28 = sshll.u32 %s1396_s8, 4  ;;  %s1397_s21 = smov 128   ;;  %s37_s28 = int_to_ptr.vmem [resolvable:$true] %s36_s28 }
  0x1e   :  { %s1398_s19 = smov 8   ;;  %s1399_s0 = smov [#allocation7]  }
  0x1f   :  { %s63_s20 = sshll.u32 %s1399_s0, 4  ;;  %s89_s1 = sshll.u32 %s1790_s7, 4  ;;  %s64_s20 = int_to_ptr.vmem [resolvable:$true] %s63_s20  ;;  %s90_s1 = int_to_ptr.hbm [resolvable:$true] %s89_s1 }
  0x20   :  { %s34_s3 = sshll.u32 %s1809_s25, 4  ;;  %s113_s25 = sshll.u32 %s1792_s9, 4  ;;  %s35_s3 = int_to_ptr.hbm [resolvable:$true] %s34_s3  ;;  %s114_s25 = int_to_ptr.hbm [resolvable:$true] %s113_s25 }
  0x21   :  { %42 = dma.hbm_to_vmem [thread:$0]  %s35_s3, 256, %s37_s28, [#allocation3], %s1397_s21, %s1397_s21, %s1398_s19  }
  0x22   :  { %s61_s6 = sshll.u32 %s1810_s11, 4  ;;  %s1400_s8 = smov [#allocation10]   ;;  %s62_s6 = int_to_ptr.hbm [resolvable:$true] %s61_s6 }
  0x23   :  { %66 = dma.hbm_to_vmem [thread:$0]  %s62_s6, 128, %s64_s20, [#allocation6]  }
  0x24   :  { %s91_s29 = sshll.u32 %s1400_s8, 4  ;;  %s1401_s3 = smov [#allocation13]   ;;  %s92_s29 = int_to_ptr.vmem [resolvable:$true] %s91_s29 }
  0x25   :  { %94 = dma.hbm_to_vmem [thread:$0]  %s90_s1, 16, %s92_s29, [#allocation9]  }
  0x26   :  { %s115_s28 = sshll.u32 %s1401_s3, 4  ;;  %s138_s0 = sshll.u32 %s1796_s13, 4  ;;  %s116_s28 = int_to_ptr.vmem [resolvable:$true] %s115_s28  ;;  %s139_s0 = int_to_ptr.hbm [resolvable:$true] %s138_s0 }
  0x27   :  { %118 = dma.hbm_to_vmem [thread:$0]  %s114_s25, 16, %s116_s28, [#allocation12]  }
  0x28   :  { %s1402_s7 = smov [#allocation16]  }
  0x29   :  { %s140_s6 = sshll.u32 %s1402_s7, 4  ;;  %s141_s6 = int_to_ptr.vmem [resolvable:$true] %s140_s6 }
  0x2a   :  { %146 = dma.hbm_to_vmem [thread:$0]  %s139_s0, 512, %s141_s6, [#allocation15], %s1392_s26, %s1392_s26, %s1393_s27  }
  0x2b   :  { %1378 = dma.done.wait [#allocation3], 256  }
  0x2c   :  { %1379 = vsyncadd [#allocation3], 4294967040 }
  0x2d   :  { %1380 = dma.done.wait [#allocation6], 256  }
  0x2e   :  { %1381 = vsyncadd [#allocation6], 4294967040 }
  0x2f   :  { %1382 = dma.done.wait [#allocation9], 528  }
  0x30   :  { %1383 = vsyncadd [#allocation9], 4294966768 }
  0x31   :  { %1384 = dma.done.wait [#allocation12], 528  }
  0x32   :  { %1385 = vsyncadd [#allocation12], 4294966768 }
  0x33   :  { %1386 = dma.done.wait [#allocation15], 528  }
  0x34   :  { %1387 = vsyncadd [#allocation15], 4294966768  ;;  %v1548_v0 = vld [vmem:[#allocation2] sm:$0xff]  ;;  %v1552_v1 = vld [vmem:[#allocation2 + $0x8] sm:$0xff]  ;;  %s1403_s9 = smov 1   ;;  %s1404_s13 = smov 63  }
  0x35   :  { %200 = vrot.lane.b32.xlu0 %v1548_v0, %s1392_s26  ;;  %v197_v2 = vld [vmem:[#allocation5] sm:$0xff]  ;;  %v198_v3 = vld [vmem:[#allocation7] sm:$0xff]  ;;  %vm199_vm0 = vcmask 1048064   ;;  %s1405_s27 = smov 65   ;;  %s1406_s20 = smov 127   ;;  %v1069_v20 = vld [vmem:[%s1787_s4 + $0x8] sm:$0xff] }
  0x36   :  { %215 = vrot.lane.b32.xlu2 %v197_v2, %s1403_s9  ;;  %v1071_v18 = vld [vmem:[%s1787_s4 + $0x18] sm:$0xff]  ;;  %v1070_v19 = vld [vmem:[%s1787_s4 + $0x10] sm:$0xff]  ;;  %v1068_v21 = vld [vmem:[%s1787_s4] sm:$0xff]  ;;  %s1811_s8 = sld [smem:[#allocation25_spill]]  ;;  %vm283_vm1 = vcmask 523264  }
  0x37   :  { %291 = vmatpush.bf16.msra.mxu1 %v1071_v18  ;;  %v1581_v22 = vld [vmem:[%s1793_s10 + $0x30] sm:$0xff]  ;;  %v1588_v23 = vld [vmem:[%s1793_s10 + $0x20] sm:$0xff]  ;;  %v1595_v24 = vld [vmem:[%s1793_s10 + $0x38] sm:$0xff]  ;;  %s1812_s3 = sld [smem:[#allocation28_spill]] }
  0x38   :  { %v1600_v25 = vld [vmem:[%s1793_s10 + $0x28] sm:$0xff]  ;;  %494 = vmatpush.msra.mxu0 %v1595_v24  ;;  %v1611_v26 = vld [vmem:[%s1793_s10 + $0x18] sm:$0xff]  ;;  %v1617_v27 = vld [vmem:[%s1793_s10 + $0x10] sm:$0xff] }
  0x39   :  { %v1625_v28 = vld [vmem:[%s1793_s10] sm:$0xff]  ;;  %v1636_v29 = vld [vmem:[%s1793_s10 + $0x8] sm:$0xff]  ;;  %v1074_v18 = vld [vmem:[#allocation8 + $0x10] sm:$0xff] }
  0x3a   :  { %495 = vmatpush.msra.mxu0 %v1581_v22  ;;  %v1111_v47 = vld [vmem:[%s1788_s5] ss:$0 sm:$0xff] }
  0x3b   :  { %292 = vmatpush.bf16.msra.mxu1 %v1070_v19  ;;  %v1073_v19 = vld [vmem:[#allocation8 + $0x8] sm:$0xff] }
  0x3c   :  { %496 = vmatpush.msra.mxu0 %v1600_v25  ;;  %v196_v30 = vld [vmem:[%s1811_s8] sm:$0xff] }
  0x3d   :  { %203 = vrot.lane.b32.xlu0 %v1552_v1, %s1392_s26  ;;  %v212_v32 = vmul.f32 %v196_v30, %v1548_v0  ;;  %v213_v33 = vmul.f32 %v196_v30, %v1552_v1  ;;  %s945_s28 = sshll.u32 %s1812_s3, 4  ;;  %s946_s28 = int_to_ptr.hbm [resolvable:$true] %s945_s28 }
  0x3e   :  { %231 = vrot.lane.b32.xlu2 %v198_v3, %s1404_s13  ;;  %497 = vmatpush.msra.mxu0 %v1588_v23 }
  0x3f   :  { %293 = vmatpush.bf16.msra.mxu1 %v1069_v20  ;;  %v1072_v20 = vld [vmem:[#allocation8] sm:$0xff] }
  0x40   :  { %498 = vmatpush.msra.mxu0 %v1611_v26 }
  0x42   :  { %499 = vmatpush.msra.mxu0 %v1617_v27 }
  0x43   :  { %294 = vmatpush.bf16.msra.mxu1 %v1068_v21  ;;  %v301_v21 = vpack.c.bf16 %v1552_v1, %v1548_v0 }
  0x44   :  { %500 = vmatpush.msra.mxu0 %v1636_v29 }
  0x46   :  { %501 = vmatpush.msra.mxu0 %v1625_v28 }
  0x48   :  { %607 = vmatpush.msrb.mxu0 %v1595_v24 }
  0x4a   :  { %608 = vmatpush.msrb.mxu0 %v1581_v22 }
  0x4c   :  { %609 = vmatpush.msrb.mxu0 %v1600_v25 }
  0x4e   :  { %610 = vmatpush.msrb.mxu0 %v1588_v23 }
  0x50   :  { %611 = vmatpush.msrb.mxu0 %v1611_v26 }
  0x52   :  { %612 = vmatpush.msrb.mxu0 %v1617_v27 }
  0x54   :  { %613 = vmatpush.msrb.mxu0 %v1636_v29 }
  0x56   :  { %614 = vmatpush.msrb.mxu0 %v1625_v28 }
  0x90   :  { %v216_v8 = vpop.permute.xlu2 %215 }
  0x98   :  { %v232_v9 = vpop.permute.xlu2 %231 }
  0xa7   :  { %v201_v4 = vpop.permute.xlu0 %200 }
  0xa8   :  { %v202_v5 = vsel %vm199_vm0, %v201_v4, %v1548_v0 }
  0xa9   :  { %206 = vrot.lane.b32.xlu1 %v202_v5, %s1392_s26 }
  0xaf   :  { %v204_v6 = vpop.permute.xlu0 %203 }
  0xb0   :  { %v205_v7 = vsel %vm199_vm0, %v204_v6, %v1552_v1 }
  0xb1   :  { %208 = vrot.lane.b32.xlu1 %v205_v7, %s1392_s26 }
 0x11b   :  { %v207_v10 = vpop.permute.xlu1 %206 }
 0x11c   :  { %v210_v11 = vsel %vm199_vm0, %v207_v10, %v1548_v0 }
 0x11d   :  { %v218_v12 = vmul.f32 %v216_v8, %v210_v11  ;;  %v234_v13 = vmul.f32 %v232_v9, %v210_v11 }
 0x11f   :  { %238 = vrot.lane.b32.xlu2 %v234_v13, %s1405_s27  ;;  %222 = vrot.lane.b32.xlu0 %v218_v12, %s1406_s20 }
 0x123   :  { %v209_v14 = vpop.permute.xlu1 %208 }
 0x124   :  { %v211_v15 = vsel %vm199_vm0, %v209_v14, %v1552_v1 }
 0x125   :  { %v219_v16 = vmul.f32 %v216_v8, %v211_v15  ;;  %v235_v17 = vmul.f32 %v232_v9, %v211_v15 }
 0x127   :  { %240 = vrot.lane.b32.xlu0 %v235_v17, %s1405_s27  ;;  %224 = vrot.lane.b32.xlu1 %v219_v16, %s1406_s20  ;;  %v1075_v17 = vld [vmem:[#allocation8 + $0x18] sm:$0xff] }
 0x128   :  { %386 = vrot.lane.b32.xlu2 %v1595_v24, %s1392_s26  ;;  %345 = vmatpush.bf16.msrb.mxu1 %v1075_v17 }
 0x12c   :  { %346 = vmatpush.bf16.msrb.mxu1 %v1074_v18 }
 0x12f   :  { %384 = vrot.lane.b32.xlu1 %v1581_v22, %s1392_s26  ;;  %380 = vrot.lane.b32.xlu0 %v1588_v23, %s1392_s26 }
 0x130   :  { %376 = vrot.lane.b32.xlu2 %v1617_v27, %s1392_s26  ;;  %347 = vmatpush.bf16.msrb.mxu1 %v1073_v19 }
 0x134   :  { %348 = vmatpush.bf16.msrb.mxu1 %v1072_v20 }
 0x137   :  { %382 = vrot.lane.b32.xlu1 %v1600_v25, %s1392_s26  ;;  %378 = vrot.lane.b32.xlu0 %v1611_v26, %s1392_s26 }
 0x138   :  { %374 = vrot.lane.b32.xlu2 %v1636_v29, %s1392_s26 }
 0x13f   :  { %372 = vrot.lane.b32.xlu1 %v1625_v28, %s1392_s26 }
 0x179   :  { %v239_v37 = vpop.permute.xlu2 %238 }
 0x182   :  { %v387_v42 = vpop.permute.xlu2 %386 }
 0x18a   :  { %v377_v45 = vpop.permute.xlu2 %376 }
 0x191   :  { %v223_v31 = vpop.permute.xlu0 %222 }
 0x192   :  { %v228_v34 = vadd.f32 %v223_v31, %v212_v32  ;;  %v375_v60 = vpop.permute.xlu2 %374 }
 0x194   :  { %v244_v39 = vadd.f32 %v239_v37, %v228_v34 }
 0x199   :  { %v225_v35 = vpop.permute.xlu1 %224  ;;  %v241_v38 = vpop.permute.xlu0 %240 }
 0x19a   :  { %v229_v36 = vadd.f32 %v225_v35, %v213_v33 }
 0x19c   :  { %v245_v40 = vadd.f32 %v241_v38, %v229_v36 }
 0x19e   :  { %v246_v41 = vpack.c.bf16 %v245_v40, %v244_v39 }
 0x1a0   :  { %978 = vmatmul.msk.bf16.vlgmr.msra.gmra.mxu1 %vm283_vm1, %v246_v41 }
 0x1a1   :  { %v385_v43 = vpop.permute.xlu1 %384  ;;  %v381_v44 = vpop.permute.xlu0 %380 }
 0x1a9   :  { %v383_v46 = vpop.permute.xlu1 %382  ;;  %v379_v49 = vpop.permute.xlu0 %378 }
 0x1b0   :  { %995 = vmatmul.msk.bf16.vlgmr.msrb.gmra.mxu1 %vm283_vm1, %v301_v21 }
 0x1b1   :  { %v373_v61 = vpop.permute.xlu1 %372 }
 0x21d   :  { %v296_v48 = vpop.f32.mrf.mxu1 }
 0x21e   :  { %v1659_v50 = vadd.f32 %v1111_v47, %v296_v48  ;;  %v1112_v48 = vld [vmem:[#allocation10] ss:$0 sm:$0xff] }
 0x220   :  { %v399_v51 = vmul.f32 %v379_v49, %v1659_v50  ;;  %v402_v52 = vmul.f32 %v385_v43, %v1659_v50  ;;  %v403_v53 = vmul.f32 %v387_v42, %v1659_v50  ;;  %v400_v54 = vmul.f32 %v381_v44, %v1659_v50 }
 0x221   :  { %v401_v55 = vmul.f32 %v383_v46, %v1659_v50  ;;  %v398_v56 = vmul.f32 %v377_v45, %v1659_v50  ;;  %v397_v2 = vmul.f32 %v375_v60, %v1659_v50  ;;  %v396_v3 = vmul.f32 %v373_v61, %v1659_v50 }
 0x222   :  { %v407_v57 = vpack.c.bf16 %v403_v53, %v402_v52 }
 0x223   :  { %v406_v58 = vpack.c.bf16 %v401_v55, %v400_v54  ;;  %v405_v59 = vpack.c.bf16 %v399_v51, %v398_v56  ;;  %v404_v10 = vpack.c.bf16 %v397_v2, %v396_v3 }
 0x224   :  { %430 = vrot.lane.b32.xlu0 %v407_v57, %s1392_s26 }
 0x225   :  { %428 = vrot.lane.b32.xlu1 %v406_v58, %s1392_s26  ;;  %v298_v62 = vpop.f32.mrf.mxu1  ;;  %426 = vrot.lane.b32.xlu2 %v405_v59, %s1392_s26 }
 0x226   :  { %v299_v63 = vadd.f32 %v1111_v47, %v298_v62 }
 0x228   :  { %v515_v4 = vmul.f32 %v385_v43, %v299_v63  ;;  %v516_v5 = vmul.f32 %v387_v42, %v299_v63  ;;  %v513_v6 = vmul.f32 %v381_v44, %v299_v63  ;;  %v514_v7 = vmul.f32 %v383_v46, %v299_v63 }
 0x229   :  { %v511_v11 = vmul.f32 %v377_v45, %v299_v63  ;;  %v512_v12 = vmul.f32 %v379_v49, %v299_v63  ;;  %v509_v13 = vmul.f32 %v373_v61, %v299_v63  ;;  %v510_v14 = vmul.f32 %v375_v60, %v299_v63 }
 0x22a   :  { %v520_v8 = vpack.c.bf16 %v516_v5, %v515_v4  ;;  %v519_v9 = vpack.c.bf16 %v514_v7, %v513_v6  ;;  %v363_v45 = vpack.c.bf16 %v1659_v50, %v1659_v50  ;;  %v508_v47 = vpack.c.bf16 %v299_v63, %v299_v63 }
 0x22b   :  { %v518_v15 = vpack.c.bf16 %v512_v12, %v511_v11  ;;  %v517_v16 = vpack.c.bf16 %v510_v14, %v509_v13 }
 0x22c   :  { %543 = vrot.lane.b32.xlu0 %v520_v8, %s1392_s26 }
 0x22d   :  { %424 = vrot.lane.b32.xlu1 %v404_v10, %s1392_s26  ;;  %541 = vrot.lane.b32.xlu2 %v519_v9, %s1392_s26  ;;  %v350_v49 = vpop.f32.mrf.mxu1 }
 0x22e   :  { %v351_v51 = vadd.f32 %v1112_v48, %v350_v49 }
 0x230   :  { %v414_v52 = vmul.f32 %v1581_v22, %v351_v51  ;;  %v415_v53 = vmul.f32 %v1595_v24, %v351_v51  ;;  %v412_v54 = vmul.f32 %v1588_v23, %v351_v51  ;;  %v413_v55 = vmul.f32 %v1600_v25, %v351_v51 }
 0x231   :  { %v410_v57 = vmul.f32 %v1617_v27, %v351_v51  ;;  %v411_v58 = vmul.f32 %v1611_v26, %v351_v51  ;;  %v408_v62 = vmul.f32 %v1625_v28, %v351_v51  ;;  %v409_v63 = vmul.f32 %v1636_v29, %v351_v51 }
 0x232   :  { %v419_v50 = vpack.c.bf16 %v415_v53, %v414_v52  ;;  %v418_v56 = vpack.c.bf16 %v413_v55, %v412_v54 }
 0x233   :  { %v417_v61 = vpack.c.bf16 %v411_v58, %v410_v57  ;;  %v416_v4 = vpack.c.bf16 %v409_v63, %v408_v62 }
 0x234   :  { %539 = vrot.lane.b32.xlu0 %v518_v15, %s1392_s26  ;;  %474 = vmatpush.bf16.msra.mxu3 %v419_v50  ;;  %v1407_v50 = vmov 64.0  }
 0x235   :  { %537 = vrot.lane.b32.xlu1 %v517_v16, %s1392_s26  ;;  %v352_v59 = vpop.f32.mrf.mxu1 }
 0x236   :  { %v353_v60 = vadd.f32 %v1112_v48, %v352_v59 }
 0x238   :  { %475 = vmatpush.bf16.msra.mxu3 %v418_v56  ;;  %v527_v2 = vmul.f32 %v1581_v22, %v353_v60  ;;  %v528_v3 = vmul.f32 %v1595_v24, %v353_v60  ;;  %v525_v6 = vmul.f32 %v1588_v23, %v353_v60  ;;  %v526_v7 = vmul.f32 %v1600_v25, %v353_v60 }
 0x239   :  { %v523_v9 = vmul.f32 %v1617_v27, %v353_v60  ;;  %v524_v10 = vmul.f32 %v1611_v26, %v353_v60  ;;  %v521_v22 = vmul.f32 %v1625_v28, %v353_v60  ;;  %v522_v24 = vmul.f32 %v1636_v29, %v353_v60 }
 0x23a   :  { %v532_v5 = vpack.c.bf16 %v528_v3, %v527_v2  ;;  %v531_v8 = vpack.c.bf16 %v526_v7, %v525_v6 }
 0x23b   :  { %v530_v11 = vpack.c.bf16 %v524_v10, %v523_v9  ;;  %v529_v12 = vpack.c.bf16 %v522_v24, %v521_v22  ;;  %v1082_v9 = vld [vmem:[#allocation16 + $0x10] sm:$0xff]  ;;  %v1081_v10 = vld [vmem:[#allocation16 + $0x8] sm:$0xff] }
 0x23c   :  { %476 = vmatpush.bf16.msra.mxu3 %v417_v61 }
 0x240   :  { %477 = vmatpush.bf16.msra.mxu3 %v416_v4 }
 0x244   :  { %587 = vmatpush.bf16.msrb.mxu3 %v532_v5 }
 0x248   :  { %588 = vmatpush.bf16.msrb.mxu3 %v531_v8  ;;  %v1083_v8 = vld [vmem:[#allocation16 + $0x18] sm:$0xff] }
 0x24c   :  { %589 = vmatpush.bf16.msrb.mxu3 %v530_v11 }
 0x250   :  { %590 = vmatpush.bf16.msrb.mxu3 %v529_v12  ;;  %v1080_v12 = vld [vmem:[#allocation16] sm:$0xff] }
 0x27f   :  { %v427_v32 = vpop.permute.xlu2 %426 }
 0x280   :  { %v439_v39 = vsel %vm283_vm1, %v427_v32, 0  ;;  %v1078_v32 = vld [vmem:[#allocation11 + $0x10] sm:$0xff] }
 0x287   :  { %v542_v37 = vpop.permute.xlu2 %541 }
 0x288   :  { %v555_v38 = vsel %vm283_vm1, %v542_v37, 0 }
 0x296   :  { %v431_v30 = vpop.permute.xlu0 %430 }
 0x297   :  { %v445_v31 = vsel %vm283_vm1, %v431_v30, 0  ;;  %v429_v33 = vpop.permute.xlu1 %428 }
 0x298   :  { %451 = vmatpush.bf16.xpose.msra.mxu2 %v445_v31  ;;  %v442_v36 = vsel %vm283_vm1, %v429_v33, 0  ;;  %v1079_v31 = vld [vmem:[#allocation11 + $0x18] sm:$0xff]  ;;  %v1077_v33 = vld [vmem:[#allocation11 + $0x8] sm:$0xff] }
 0x29e   :  { %v544_v34 = vpop.permute.xlu0 %543 }
 0x29f   :  { %v558_v35 = vsel %vm283_vm1, %v544_v34, 0  ;;  %v425_v40 = vpop.permute.xlu1 %424  ;;  %v1076_v34 = vld [vmem:[#allocation11] sm:$0xff] }
 0x2a0   :  { %452 = vmatpush.bf16.xpose.msra.mxu2 %v442_v36  ;;  %564 = vmatpush.bf16.xpose.msra.mxu1 %v558_v35  ;;  %v436_v43 = vsel %vm283_vm1, %v425_v40, 0 }
 0x2a6   :  { %v540_v41 = vpop.permute.xlu0 %539 }
 0x2a7   :  { %v552_v42 = vsel %vm283_vm1, %v540_v41, 0  ;;  %v538_v44 = vpop.permute.xlu1 %537 }
 0x2a8   :  { %453 = vmatpush.bf16.xpose.msra.mxu2 %v439_v39  ;;  %565 = vmatpush.bf16.xpose.msra.mxu1 %v555_v38  ;;  %v549_v46 = vsel %vm283_vm1, %v538_v44, 0 }
 0x2b0   :  { %454 = vmatpush.bf16.xpose.msra.mxu2 %v436_v43  ;;  %566 = vmatpush.bf16.xpose.msra.mxu1 %v552_v42 }
 0x2b7   :  { %996 = vmatmul.msk.bf16.vlgmr.msra.gmra.mxu2 %vm283_vm1, %v363_v45 }
 0x2b8   :  { %567 = vmatpush.bf16.xpose.msra.mxu1 %v549_v46  ;;  %665 = vmatpush.bf16.msrb.mxu2 %v1079_v31  ;;  %v1113_v46 = vld [vmem:[#allocation13] ss:$0 sm:$0xff] }
 0x2bc   :  { %666 = vmatpush.bf16.msrb.mxu2 %v1078_v32 }
 0x2bf   :  { %999 = vmatmul.msk.bf16.vlgmr.msra.gmra.mxu1 %vm283_vm1, %v508_v47 }
 0x2c0   :  { %667 = vmatpush.bf16.msrb.mxu2 %v1077_v33 }
 0x2c4   :  { %668 = vmatpush.bf16.msrb.mxu2 %v1076_v34  ;;  %v1114_v34 = vld [vmem:[#allocation14] ss:$0 sm:$0xff] }
 0x33a   :  { %v456_v13 = vpop.f32.mrf.mxu2 }
 0x33b   :  { %v460_v23 = vsel %vm283_vm1, %v456_v13, -inf }
 0x33c   :  { %v569_v25 = vpop.f32.mrf.mxu1  ;;  %461 = vmax.xlane.f32.xlu2 %v460_v23 }
 0x33d   :  { %v573_v14 = vsel %vm283_vm1, %v569_v25, -inf }
 0x33e   :  { %574 = vmax.xlane.f32.xlu0 %v573_v14  ;;  %v1090_v14 = vld [vmem:[%s1798_s15 + $0x30] sm:$0xff] }
 0x342   :  { %v458_v15 = vpop.f32.mrf.mxu2 }
 0x344   :  { %v571_v27 = vpop.f32.mrf.mxu1 }
 0x3af   :  { %v462_v16 = vpop.xlane.xlu2 %461 }
 0x3b0   :  { %v463_v26 = vsub.f32 %v456_v13, %v462_v16  ;;  %v1091_v13 = vld [vmem:[%s1798_s15 + $0x38] sm:$0xff] }
 0x3b1   :  { %v575_v17 = vpop.xlane.xlu0 %574 }
 0x3b2   :  { %v464_v18 = vmul.f32 1.442695, %v463_v26  ;;  %v576_v28 = vsub.f32 %v569_v25, %v575_v17  ;;  %v1089_v26 = vld [vmem:[%s1798_s15 + $0x28] sm:$0xff] }
 0x3b4   :  { %1120 = vpow2.f32 %v464_v18  ;;  %v577_v19 = vmul.f32 1.442695, %v576_v28  ;;  %v1088_v28 = vld [vmem:[%s1798_s15 + $0x20] sm:$0xff] }
 0x3b6   :  { %1122 = vpow2.f32 %v577_v19 }
 0x3ba   :  { %v1121_v29 = vpop.eup %1120 }
 0x3bb   :  { %998 = vmatmul.msk.f32.vlgmr.msra.gmra.mxu0 %vm283_vm1, %v1121_v29  ;;  %v466_v20 = vpack.c.bf16 %v1121_v29, %v1121_v29 }
 0x3bc   :  { %v1123_v21 = vpop.eup %1122  ;;  %865 = vmatpush.bf16.msra.mxu0 %v1091_v13 }
 0x3bd   :  { %997 = vmatmul.msk.bf16.vlgmr.msra.gmra.mxu3 %vm283_vm1, %v466_v20  ;;  %v579_v30 = vpack.c.bf16 %v1123_v21, %v1123_v21 }
 0x3be   :  { %784 = vmatpush.bf16.msra.mxu3 %v1083_v8 }
 0x3c0   :  { %866 = vmatpush.bf16.msra.mxu0 %v1090_v14 }
 0x3c2   :  { %785 = vmatpush.bf16.msra.mxu3 %v1082_v9 }
 0x3c3   :  { %1001 = vmatmul.msk.f32.vlgmr.msrb.gmra.mxu0 %vm283_vm1, %v1123_v21 }
 0x3c4   :  { %867 = vmatpush.bf16.msra.mxu0 %v1089_v26 }
 0x3c6   :  { %786 = vmatpush.bf16.msra.mxu3 %v1081_v10 }
 0x3c8   :  { %868 = vmatpush.bf16.msra.mxu0 %v1088_v28 }
 0x3ca   :  { %787 = vmatpush.bf16.msra.mxu3 %v1080_v12 }
 0x3cd   :  { %1000 = vmatmul.msk.bf16.vlgmr.msrb.gmra.mxu3 %vm283_vm1, %v579_v30 }
 0x438   :  { %v503_v35 = vpop.f32.mrf.mxu0 }
 0x439   :  { %1124 = vrcp.f32 %v503_v35 }
 0x43f   :  { %v1125_v39 = vpop.eup %1124 }
 0x440   :  { %v479_v36 = vpop.f32.mrf.mxu3  ;;  %v616_v37 = vpop.f32.mrf.mxu0 }
 0x441   :  { %1126 = vrcp.f32 %v616_v37  ;;  %v507_v42 = vmul.f32 %v1125_v39, %v479_v36 }
 0x442   :  { %1128 = vrcp.f32 %v1407_v50 }
 0x447   :  { %v1127_v40 = vpop.eup %1126 }
 0x448   :  { %v481_v38 = vpop.f32.mrf.mxu3  ;;  %v1129_v56 = vpop.eup %1128 }
 0x449   :  { %v684_v57 = vmul.f32 64.0, %v1129_v56  ;;  %vm688_vm2 = vweird.f32 %v1129_v56  ;;  %v1115_v38 = vld [vmem:[%s1795_s12] ss:$0 sm:$0xff] }
 0x44b   :  { %v685_v58 = vsub.f32 1.0, %v684_v57  ;;  %v1117_v57 = vld [vmem:[%s1799_s16] ss:$0 sm:$0xff] }
 0x44d   :  { %v686_v59 = vmul.f32 %v1129_v56, %v685_v58 }
 0x44f   :  { %v687_v60 = vadd.f32 %v1129_v56, %v686_v59 }
 0x450   :  { %v592_v41 = vpop.f32.mrf.mxu3 }
 0x451   :  { %v620_v43 = vmul.f32 %v1127_v40, %v592_v41  ;;  %v1719_v61 = vsel %vm688_vm2, %v1129_v56, %v687_v60 }
 0x453   :  { %v621_v44 = vpack.c.bf16 %v620_v43, %v507_v42 }
 0x455   :  { %1018 = vmatmul.msk.bf16.vlgmr.msrb.gmra.mxu2 %vm283_vm1, %v621_v44 }
 0x458   :  { %v594_v45 = vpop.f32.mrf.mxu3 }
 0x459   :  { %v1087_v45 = vld [vmem:[%s1798_s15 + $0x18] sm:$0xff] }
 0x45a   :  { %869 = vmatpush.bf16.msra.mxu0 %v1087_v45 }
 0x4d8   :  { %v670_v47 = vpop.f32.mrf.mxu2 }
 0x4d9   :  { %v671_v48 = vadd.f32 %v1113_v46, %v670_v47  ;;  %v1085_v47 = vld [vmem:[%s1798_s15 + $0x8] sm:$0xff] }
 0x4db   :  { %v675_v49 = vadd.f32 %v671_v48, %v1548_v0  ;;  %v1084_v48 = vld [vmem:[%s1798_s15] sm:$0xff] }
 0x4dd   :  { %v677_v51 = vsel %vm283_vm1, %v675_v49, 0.0 }
 0x4de   :  { %678 = vadd.xlane.f32.xlu1 %v677_v51  ;;  %v1116_v51 = vld [vmem:[%s1797_s14] ss:$0 sm:$0xff] }
 0x4e0   :  { %v672_v52 = vpop.f32.mrf.mxu2 }
 0x4e1   :  { %v673_v53 = vadd.f32 %v1113_v46, %v672_v52  ;;  %v1086_v46 = vld [vmem:[%s1798_s15 + $0x10] sm:$0xff] }
 0x4e2   :  { %870 = vmatpush.bf16.msra.mxu0 %v1086_v46 }
 0x4e3   :  { %v676_v54 = vadd.f32 %v673_v53, %v1552_v1 }
 0x4e5   :  { %v680_v55 = vsel %vm283_vm1, %v676_v54, 0.0 }
 0x4e6   :  { %681 = vadd.xlane.f32.xlu2 %v680_v55  ;;  %871 = vmatpush.bf16.msra.mxu0 %v1085_v47 }
 0x4ea   :  { %872 = vmatpush.bf16.msra.mxu0 %v1084_v48 }
 0x551   :  { %v679_v0 = vpop.xlane.xlu1 %678 }
 0x552   :  { %v690_v62 = vmul.f32 %v1719_v61, %v679_v0 }
 0x554   :  { %v692_v63 = vsub.f32 %v675_v49, %v690_v62 }
 0x556   :  { %v694_v2 = vmul.f32 %v692_v63, %v692_v63 }
 0x558   :  { %v696_v1 = vsel %vm283_vm1, %v694_v2, 0.0 }
 0x559   :  { %v682_v3 = vpop.xlane.xlu2 %681  ;;  %697 = vadd.xlane.f32.xlu2 %v696_v1 }
 0x55a   :  { %v691_v4 = vmul.f32 %v1719_v61, %v682_v3 }
 0x55c   :  { %v693_v5 = vsub.f32 %v676_v54, %v691_v4 }
 0x55e   :  { %v695_v6 = vmul.f32 %v693_v5, %v693_v5 }
 0x560   :  { %v699_v7 = vsel %vm283_vm1, %v695_v6, 0.0 }
 0x561   :  { %700 = vadd.xlane.f32.xlu0 %v699_v7 }
 0x5cc   :  { %v698_v11 = vpop.xlane.xlu2 %697 }
 0x5cd   :  { %v702_v22 = vmul.f32 %v698_v11, %v1719_v61 }
 0x5cf   :  { %v704_v24 = vadd.f32 1e-05, %v702_v22 }
 0x5d1   :  { %1130 = vrsqrt.f32 %v704_v24  ;;  %vm712_vm4 = vweird.f32 %v704_v24 }
 0x5d4   :  { %v701_v23 = vpop.xlane.xlu0 %700 }
 0x5d5   :  { %v703_v25 = vmul.f32 %v701_v23, %v1719_v61 }
 0x5d7   :  { %v1131_v15 = vpop.eup %1130  ;;  %v705_v27 = vadd.f32 1e-05, %v703_v25 }
 0x5d8   :  { %v707_v16 = vmul.f32 %v1131_v15, %v704_v24  ;;  %vm713_vm3 = vweird.f32 %v1131_v15 }
 0x5d9   :  { %1132 = vrsqrt.f32 %v705_v27  ;;  %vm714_vm5 = vmor %vm712_vm4, %vm713_vm3  ;;  %vm722_vm7 = vweird.f32 %v705_v27 }
 0x5da   :  { %v708_v17 = vmul.f32 %v1131_v15, %v707_v16 }
 0x5dc   :  { %v709_v18 = vmul.f32 0.5, %v708_v17 }
 0x5de   :  { %v710_v19 = vsub.f32 1.5, %v709_v18 }
 0x5df   :  { %v1133_v29 = vpop.eup %1132 }
 0x5e0   :  { %v711_v20 = vmul.f32 %v1131_v15, %v710_v19  ;;  %v717_v21 = vmul.f32 %v1133_v29, %v705_v27  ;;  %vm723_vm6 = vweird.f32 %v1133_v29 }
 0x5e1   :  { %vm724_vm8 = vmor %vm722_vm7, %vm723_vm6 }
 0x5e2   :  { %v718_v30 = vmul.f32 %v1133_v29, %v717_v21  ;;  %v715_v31 = vsel %vm714_vm5, %v1131_v15, %v711_v20 }
 0x5e3   :  { %v726_v35 = vmul.f32 %v715_v31, %v692_v63 }
 0x5e4   :  { %v719_v32 = vmul.f32 0.5, %v718_v30  ;;  %v1119_v30 = vld [vmem:[%s1801_s18] ss:$0 sm:$0xff] }
 0x5e5   :  { %v732_v39 = vmul.f32 %v1114_v34, %v726_v35 }
 0x5e6   :  { %v720_v33 = vsub.f32 1.5, %v719_v32 }
 0x5e7   :  { %v738_v42 = vadd.f32 %v1115_v38, %v732_v39 }
 0x5e8   :  { %v721_v36 = vmul.f32 %v1133_v29, %v720_v33 }
 0x5ea   :  { %v725_v37 = vsel %vm724_vm8, %v1133_v29, %v721_v36  ;;  %v1118_v29 = vld [vmem:[%s1800_s17] ss:$0 sm:$0xff]  ;;  %s1408_s17 = smov [#allocation17]  }
 0x5eb   :  { %v727_v40 = vmul.f32 %v725_v37, %v693_v5  ;;  %s943_s29 = sshll.u32 %s1408_s17, 4  ;;  %s944_s29 = int_to_ptr.vmem [resolvable:$true] %s943_s29 }
 0x5ed   :  { %v733_v41 = vmul.f32 %v1114_v34, %v727_v40 }
 0x5ef   :  { %v739_v43 = vadd.f32 %v1115_v38, %v733_v41 }
 0x5f1   :  { %v740_v44 = vpack.c.bf16 %v739_v43, %v738_v42 }
 0x5f3   :  { %1035 = vmatmul.msk.bf16.vlgmr.msra.gmra.mxu3 %vm283_vm1, %v740_v44 }
 0x676   :  { %v789_v49 = vpop.f32.mrf.mxu3 }
 0x677   :  { %v790_v52 = vadd.f32 %v1116_v51, %v789_v49 }
 0x679   :  { %v794_v55 = vmax.f32 %v790_v52, 0.0 }
 0x67e   :  { %v791_v53 = vpop.f32.mrf.mxu3 }
 0x67f   :  { %v792_v54 = vadd.f32 %v1116_v51, %v791_v53 }
 0x681   :  { %v795_v50 = vmax.f32 %v792_v54, 0.0 }
 0x683   :  { %v796_v56 = vpack.c.bf16 %v795_v50, %v794_v55 }
 0x685   :  { %873 = vmatmul.bf16.vlgmr.msra.gmra.mxu0 %v796_v56 }
 0x702   :  { %v874_v58 = vpop.f32.mrf.mxu0 }
 0x703   :  { %v875_v59 = vadd.f32 %v1117_v57, %v874_v58 }
 0x705   :  { %v879_v60 = vadd.f32 %v875_v59, %v738_v42 }
 0x707   :  { %v881_v0 = vsel %vm283_vm1, %v879_v60, 0.0 }
 0x708   :  { %882 = vadd.xlane.f32.xlu1 %v881_v0 }
 0x70a   :  { %v876_v62 = vpop.f32.mrf.mxu0 }
 0x70b   :  { %v877_v63 = vadd.f32 %v1117_v57, %v876_v62 }
 0x70d   :  { %v880_v2 = vadd.f32 %v877_v63, %v739_v43 }
 0x70f   :  { %v884_v1 = vsel %vm283_vm1, %v880_v2, 0.0 }
 0x710   :  { %885 = vadd.xlane.f32.xlu2 %v884_v1 }
 0x77b   :  { %v883_v3 = vpop.xlane.xlu1 %882 }
 0x77c   :  { %v887_v4 = vmul.f32 %v883_v3, %v1719_v61 }
 0x77e   :  { %v889_v5 = vsub.f32 %v879_v60, %v887_v4 }
 0x780   :  { %v891_v6 = vmul.f32 %v889_v5, %v889_v5 }
 0x782   :  { %v893_v7 = vsel %vm283_vm1, %v891_v6, 0.0 }
 0x783   :  { %v886_v8 = vpop.xlane.xlu2 %885  ;;  %894 = vadd.xlane.f32.xlu0 %v893_v7 }
 0x784   :  { %v888_v9 = vmul.f32 %v886_v8, %v1719_v61 }
 0x786   :  { %v890_v10 = vsub.f32 %v880_v2, %v888_v9 }
 0x788   :  { %v892_v11 = vmul.f32 %v890_v10, %v890_v10 }
 0x78a   :  { %v896_v22 = vsel %vm283_vm1, %v892_v11, 0.0 }
 0x78b   :  { %897 = vadd.xlane.f32.xlu1 %v896_v22 }
 0x7f6   :  { %v895_v24 = vpop.xlane.xlu0 %894 }
 0x7f7   :  { %v899_v12 = vmul.f32 %v895_v24, %v1719_v61 }
 0x7f9   :  { %v901_v13 = vadd.f32 1e-05, %v899_v12 }
 0x7fb   :  { %1134 = vrsqrt.f32 %v901_v13  ;;  %vm909_vm10 = vweird.f32 %v901_v13 }
 0x7fe   :  { %v898_v23 = vpop.xlane.xlu1 %897 }
 0x7ff   :  { %v900_v25 = vmul.f32 %v898_v23, %v1719_v61 }
 0x801   :  { %v1135_v14 = vpop.eup %1134  ;;  %v902_v15 = vadd.f32 1e-05, %v900_v25 }
 0x802   :  { %v904_v27 = vmul.f32 %v1135_v14, %v901_v13  ;;  %vm910_vm9 = vweird.f32 %v1135_v14 }
 0x803   :  { %1136 = vrsqrt.f32 %v902_v15  ;;  %vm911_vm11 = vmor %vm909_vm10, %vm910_vm9  ;;  %vm919_vm13 = vweird.f32 %v902_v15 }
 0x804   :  { %v905_v16 = vmul.f32 %v1135_v14, %v904_v27 }
 0x806   :  { %v906_v26 = vmul.f32 0.5, %v905_v16 }
 0x808   :  { %v907_v17 = vsub.f32 1.5, %v906_v26 }
 0x809   :  { %v1137_v18 = vpop.eup %1136 }
 0x80a   :  { %v908_v28 = vmul.f32 %v1135_v14, %v907_v17  ;;  %v914_v19 = vmul.f32 %v1137_v18, %v902_v15  ;;  %vm920_vm12 = vweird.f32 %v1137_v18 }
 0x80b   :  { %vm921_vm14 = vmor %vm919_vm13, %vm920_vm12 }
 0x80c   :  { %v912_v20 = vsel %vm911_vm11, %v1135_v14, %v908_v28  ;;  %v915_v21 = vmul.f32 %v1137_v18, %v914_v19 }
 0x80d   :  { %v923_v61 = vmul.f32 %v912_v20, %v889_v5 }
 0x80e   :  { %v916_v31 = vmul.f32 0.5, %v915_v21 }
 0x80f   :  { %v929_v32 = vmul.f32 %v1118_v29, %v923_v61 }
 0x810   :  { %v917_v33 = vsub.f32 1.5, %v916_v31 }
 0x811   :  { %v935_v34 = vadd.f32 %v1119_v30, %v929_v32 }
 0x812   :  { %v918_v35 = vmul.f32 %v1137_v18, %v917_v33 }
 0x813   :  { %937 = vst.msk [vmem:[#allocation17] sm:$0xff] %vm283_vm1, %v935_v34 }
 0x814   :  { %v922_v36 = vsel %vm921_vm14, %v1137_v18, %v918_v35 }
 0x815   :  { %v924_v37 = vmul.f32 %v922_v36, %v890_v10 }
 0x817   :  { %v930_v38 = vmul.f32 %v1118_v29, %v924_v37 }
 0x819   :  { %v936_v39 = vadd.f32 %v1119_v30, %v930_v38 }
 0x81b   :  { %938 = vst.msk [vmem:[#allocation17 + $0x8] sm:$0xff] %vm283_vm1, %v936_v39 }
 0x81c   :  { %951 = dma.vmem_to_hbm [thread:$0]  %s944_s29, 256, %s946_s28, [#allocation4], %s1397_s21, %s1397_s21, %s1398_s19  }
 0x81d   :  { %1388 = dma.done.wait [#allocation4], 256  }
 0x81e   :  { %1389 = vsyncadd [#allocation4], 4294967040 }
 0x81f   :  { %956 = vsyncpa [#allocation3], 1 }
 0x820   :  { %957 = vsyncpa [#allocation6], 1 }
 0x821   :  { %958 = vsyncpa [#allocation9], 1 }
 0x822   :  { %959 = vsyncpa [#allocation12], 1 }
 0x823   :  { %960 = vsyncpa [#allocation15], 1 }
 0x824   :  { %961 = vsyncpa [#allocation4], 1 }

</bundles_post_ra>
